<compile_context>
chip_gen: v5e
topology: v5e:2x2
jax: 0.10.0
libtpu: 0.0.40
codegen_flags: <defaults>
</compile_context>

<pallas_src>
import functools

import jax
import jax.numpy as jnp
from jax import lax
from jax.experimental import pallas as pl
from jax.experimental.pallas import tpu as pltpu

NUM_GROUPS = 32
EPS = 1e-6


# ----------------------------------------------------------------------------
# Kernel A: GroupNorm + fused QKV projection (one grid step per batch element)
# ----------------------------------------------------------------------------
def norm_qkv_kernel(x_ref, gamma_ref, beta_ref, gmat_ref, wqkv_ref, bqkv_ref,
                    q_ref, k_ref, v_ref, *, eps):
    x = x_ref[0]                                      # (HW, C) f32
    HW, C = x.shape

    # ---- GroupNorm(32, eps, affine) ----------------------------------------
    s1 = jnp.sum(x, axis=0, keepdims=True)            # (1, C) per-channel sums
    s2 = jnp.sum(x * x, axis=0, keepdims=True)        # (1, C)
    # gmat[c, c'] = 1/(HW*cpg) if c, c' share a group else 0, so these two tiny
    # matmuls directly yield the per-channel group mean / E[x^2].
    mean = jnp.dot(s1, gmat_ref[...], preferred_element_type=jnp.float32)
    ex2 = jnp.dot(s2, gmat_ref[...], preferred_element_type=jnp.float32)
    var = jnp.maximum(ex2 - mean * mean, 0.0)         # clamp cancellation
    inv = lax.rsqrt(var + jnp.float32(eps))
    h = (x - mean) * (inv * gamma_ref[...]) + beta_ref[...]

    # ---- fused q/k/v 1x1 convs: one (HW, C) @ (C, 3C) bf16 matmul -----------
    h16 = h.astype(jnp.bfloat16)
    qkv = jnp.dot(h16, wqkv_ref[...],
                  preferred_element_type=jnp.float32) + bqkv_ref[...]
    qkv = qkv.astype(jnp.bfloat16)
    q_ref[0] = qkv[:, :C]             # q already carries the 1/sqrt(C) scale
    k_ref[0] = qkv[:, C:2 * C]
    v_ref[0] = qkv[:, 2 * C:]


# ----------------------------------------------------------------------------
# Kernel B: attention + output projection + residual for one query-row tile
# ----------------------------------------------------------------------------
def attn_kernel(x_ref, q_ref, k_ref, v_ref, wp_ref, bp_ref, o_ref):
    q = q_ref[0]                                      # (TQ, C) bf16, pre-scaled
    k = k_ref[0]                                      # (HW, C) bf16
    v = v_ref[0]                                      # (HW, C) bf16

    # logits = q @ k^T without materializing k.T (contract on the C axis).
    logits = lax.dot_general(q, k, (((1,), (1,)), ((), ())),
                             preferred_element_type=jnp.float32)   # (TQ, HW)
    m = jnp.max(logits, axis=-1, keepdims=True)
    e = jnp.exp(logits - m)
    p = e * pl.reciprocal(jnp.sum(e, axis=-1, keepdims=True), approx=True)

    ctx = jnp.dot(p.astype(jnp.bfloat16), v,
                  preferred_element_type=jnp.float32)              # (TQ, C)
    proj = jnp.dot(ctx.astype(jnp.bfloat16), wp_ref[...],
                   preferred_element_type=jnp.float32) + bp_ref[...]
    o_ref[0] = x_ref[0] + proj                        # f32 residual add


# ----------------------------------------------------------------------------
# Wrapper
# ----------------------------------------------------------------------------
def _choose_tq(hw):
    if hw <= 512:
        return hw
    for t in (256, 128, 64, 32, 16, 8):
        if hw % t == 0:
            return t
    return hw   # TODO(synk): ragged HW falls back to a single tile; could pad.


def _vmem_limit(nbytes):
    # Explicit scoped-VMEM budget derived from tile sizes, clamped to a range
    # valid across v5e/v6e (128 MiB physical) and v7x (64 MiB physical).
    return int(min(max(nbytes, 16 * 1024 * 1024), 64 * 1024 * 1024))


def attn_block(x_nchw, params):
    B, C, H, W = x_nchw.shape
    HW = H * W
    G = NUM_GROUPS
    cpg = C // G
    tq = _choose_tq(HW)
    n_q = HW // tq

    # NCHW -> (B, HW, C) channels-last, spatially flattened.
    x_lay = jnp.transpose(x_nchw, (0, 2, 3, 1)).reshape(B, HW, C).astype(jnp.float32)

    # Host-side parameter prep.
    gamma = params["gamma"].reshape(1, C).astype(jnp.float32)
    beta = params["beta"].reshape(1, C).astype(jnp.float32)
    # Group pooling matrix with 1/(HW*cpg) folded in.
    gidx = jnp.arange(C, dtype=jnp.int32) // cpg
    gmat = (gidx[:, None] == gidx[None, :]).astype(jnp.float32) / jnp.float32(HW * cpg)
    # PyTorch 1x1 conv weight (C_out, C_in, 1, 1) -> (C_in, C_out); fold the
    # softmax scale into the q weights/bias; fuse q/k/v into one (C, 3C) bf16.
    scale = jnp.float32(C) ** jnp.float32(-0.5)
    wq = params["wq"].reshape(C, C).T * scale
    wk = params["wk"].reshape(C, C).T
    wv = params["wv"].reshape(C, C).T
    wqkv = jnp.concatenate([wq, wk, wv], axis=1).astype(jnp.bfloat16)      # (C, 3C)
    bqkv = jnp.concatenate([params["bq"] * scale, params["bk"], params["bv"]]
                           ).reshape(1, 3 * C).astype(jnp.float32)
    wp = params["wp"].reshape(C, C).T.astype(jnp.bfloat16)
    bp = params["bp"].reshape(1, C).astype(jnp.float32)

    f32b, bf16b = 4, 2

    # -------------------- Kernel A: GroupNorm + fused QKV --------------------
    est_a = (2 * HW * C * f32b                       # x block (double buffered)
             + 2 * 3 * HW * C * bf16b                # q/k/v output blocks
             + C * C * f32b + 3 * C * C * bf16b      # gmat + fused weights
             + 4 * HW * C * f32b                     # h / qkv intermediates
             + (8 << 20))
    qkv_out = pl.pallas_call(
        functools.partial(norm_qkv_kernel, eps=EPS),
        out_shape=tuple(jax.ShapeDtypeStruct((B, HW, C), jnp.bfloat16)
                        for _ in range(3)),
        grid_spec=pltpu.PrefetchScalarGridSpec(
            num_scalar_prefetch=0,
            grid=(B,),
            in_specs=[
                pl.BlockSpec((1, HW, C), lambda b: (b, 0, 0)),      # x
                pl.BlockSpec((1, C), lambda b: (0, 0)),             # gamma
                pl.BlockSpec((1, C), lambda b: (0, 0)),             # beta
                pl.BlockSpec((C, C), lambda b: (0, 0)),             # gmat
                pl.BlockSpec((C, 3 * C), lambda b: (0, 0)),         # wqkv
                pl.BlockSpec((1, 3 * C), lambda b: (0, 0)),         # bqkv
            ],
            out_specs=tuple(pl.BlockSpec((1, HW, C), lambda b: (b, 0, 0))
                            for _ in range(3))),
        compiler_params=pltpu.CompilerParams(
            dimension_semantics=("parallel",),
            vmem_limit_bytes=_vmem_limit(est_a)),
    )(x_lay, gamma, beta, gmat, wqkv, bqkv)
    q_lay, k_lay, v_lay = qkv_out

    # ------------- Kernel B: tiled attention + proj_out + residual -----------
    # TODO(synk): for C < 128 (like this toy case) the lanes are under-filled;
    # padding C to 128 would need group-aware zero handling in GroupNorm.
    est_b = (2 * 2 * HW * C * bf16b                  # k/v blocks (double buffered)
             + 2 * 3 * tq * C * f32b                 # x / q / out tiles
             + 4 * tq * HW * f32b                    # logits / exp intermediates
             + C * C * bf16b
             + (8 << 20))
    out_lay = pl.pallas_call(
        attn_kernel,
        out_shape=jax.ShapeDtypeStruct((B, HW, C), jnp.float32),
        grid_spec=pltpu.PrefetchScalarGridSpec(
            num_scalar_prefetch=0,
            grid=(B, n_q),
            in_specs=[
                pl.BlockSpec((1, tq, C), lambda b, i: (b, i, 0)),   # x (residual)
                pl.BlockSpec((1, tq, C), lambda b, i: (b, i, 0)),   # q tile
                pl.BlockSpec((1, HW, C), lambda b, i: (b, 0, 0)),   # k (resident)
                pl.BlockSpec((1, HW, C), lambda b, i: (b, 0, 0)),   # v (resident)
                pl.BlockSpec((C, C), lambda b, i: (0, 0)),          # wp
                pl.BlockSpec((1, C), lambda b, i: (0, 0)),          # bp
            ],
            out_specs=pl.BlockSpec((1, tq, C), lambda b, i: (b, i, 0))),
        compiler_params=pltpu.CompilerParams(
            dimension_semantics=("parallel", "parallel"),
            vmem_limit_bytes=_vmem_limit(est_b)),
    )(x_lay, q_lay, k_lay, v_lay, wp, bp)

    return out_lay.reshape(B, H, W, C).transpose(0, 3, 1, 2)


# ----------------------------------------------------------------------------
# Pure-JAX reference (reproduction of the PyTorch forward, NCHW, f32)
# ----------------------------------------------------------------------------
def reference(x, params):
    B, C, H, W = x.shape
    xg = x.reshape(B, NUM_GROUPS, C // NUM_GROUPS, H, W)
    mean = xg.mean(axis=(2, 3, 4), keepdims=True)
    var = xg.var(axis=(2, 3, 4), keepdims=True)
    h = ((xg - mean) / jnp.sqrt(var + EPS)).reshape(B, C, H, W)
    h = h * params["gamma"][None, :, None, None] + params["beta"][None, :, None, None]

    def conv1x1(t, w, b):
        return (jnp.einsum("bchw,oc->bohw", t, w.reshape(C, C))
                + b[None, :, None, None])

    q = conv1x1(h, params["wq"], params["bq"])
    k = conv1x1(h, params["wk"], params["bk"])
    v = conv1x1(h, params["wv"], params["bv"])
    q = q.reshape(B, C, H * W).transpose(0, 2, 1)
    k = k.reshape(B, C, H * W)
    w_ = jnp.einsum("bic,bcj->bij", q, k) * (C ** -0.5)
    w_ = jax.nn.softmax(w_, axis=2)
    v = v.reshape(B, C, H * W)
    hout = jnp.einsum("bcj,bij->bci", v, w_).reshape(B, C, H, W)
    hout = conv1x1(hout, params["wp"], params["bp"])
    return x + hout


if __name__ == "__main__":
    # GroupNorm(num_groups=32) requires channels % 32 == 0 -> smallest case C=32.
    B, C, H, W = 2, 32, 8, 8
    key = jax.random.PRNGKey(0)
    ks = jax.random.split(key, 11)

    params = {
        "gamma": 1.0 + 0.1 * jax.random.normal(ks[0], (C,), jnp.float32),
        "beta": 0.1 * jax.random.normal(ks[1], (C,), jnp.float32),
        "wq": 0.1 * jax.random.normal(ks[2], (C, C, 1, 1), jnp.float32),
        "bq": 0.1 * jax.random.normal(ks[3], (C,), jnp.float32),
        "wk": 0.1 * jax.random.normal(ks[4], (C, C, 1, 1), jnp.float32),
        "bk": 0.1 * jax.random.normal(ks[5], (C,), jnp.float32),
        "wv": 0.1 * jax.random.normal(ks[6], (C, C, 1, 1), jnp.float32),
        "bv": 0.1 * jax.random.normal(ks[7], (C,), jnp.float32),
        "wp": 0.1 * jax.random.normal(ks[8], (C, C, 1, 1), jnp.float32),
        "bp": 0.1 * jax.random.normal(ks[9], (C,), jnp.float32),
    }
    x = jax.random.normal(ks[10], (B, C, H, W), jnp.float32)

    out = jax.block_until_ready(attn_block(x, params))
    ref = jax.block_until_ready(reference(x, params))

    assert out.shape == x.shape and out.dtype == jnp.float32
    assert jnp.allclose(out, ref, rtol=1e-2, atol=1e-2), (
        f"max abs err {jnp.max(jnp.abs(out - ref))}")
    print("KERNEL_OK")
</pallas_src>

<mosaic_0001>
module attributes {stable_mosaic.version = 11 : i64} {
  func.func @norm_qkv_kernel(%arg0: i32, %arg1: memref<1x64x32xf32, #tpu.memory_space<vmem>>, %arg2: memref<1x32xf32, #tpu.memory_space<vmem>>, %arg3: memref<1x32xf32, #tpu.memory_space<vmem>>, %arg4: memref<32x32xf32, #tpu.memory_space<vmem>>, %arg5: memref<32x96xbf16, #tpu.memory_space<vmem>>, %arg6: memref<1x96xf32, #tpu.memory_space<vmem>>, %arg7: memref<1x64x32xbf16, #tpu.memory_space<vmem>>, %arg8: memref<1x64x32xbf16, #tpu.memory_space<vmem>>, %arg9: memref<1x64x32xbf16, #tpu.memory_space<vmem>>) attributes {dimension_semantics = [#tpu.dimension_semantics<parallel>], iteration_bounds = array<i64: 2>, scalar_prefetch = 0 : i64, scratch_operands = 0 : i64, tpu.core_type = #tpu.core_type<tc>, window_params = [{transform_indices = @transform_0, window_bounds = array<i64: 1, 64, 32>}, {pipeline_mode = #tpu.pipeline_mode<synchronous>, transform_indices = @transform_1, window_bounds = array<i64: 1, 32>}, {pipeline_mode = #tpu.pipeline_mode<synchronous>, transform_indices = @transform_2, window_bounds = array<i64: 1, 32>}, {pipeline_mode = #tpu.pipeline_mode<synchronous>, transform_indices = @transform_3, window_bounds = array<i64: 32, 32>}, {pipeline_mode = #tpu.pipeline_mode<synchronous>, transform_indices = @transform_4, window_bounds = array<i64: 32, 96>}, {pipeline_mode = #tpu.pipeline_mode<synchronous>, transform_indices = @transform_5, window_bounds = array<i64: 1, 96>}, {transform_indices = @transform_6, window_bounds = array<i64: 1, 64, 32>}, {transform_indices = @transform_7, window_bounds = array<i64: 1, 64, 32>}, {transform_indices = @transform_8, window_bounds = array<i64: 1, 64, 32>}]} {
    %c0 = arith.constant 0 : index
    %c0_0 = arith.constant 0 : index
    %c0_1 = arith.constant 0 : index
    %0 = vector.load %arg1[%c0, %c0_0, %c0_1] : memref<1x64x32xf32, #tpu.memory_space<vmem>>, vector<1x64x32xf32>
    %1 = vector.shape_cast %0 : vector<1x64x32xf32> to vector<64x32xf32>
    %cst = arith.constant dense<0.000000e+00> : vector<32xf32>
    %2 = vector.multi_reduction <add>, %1, %cst [0] : vector<64x32xf32> to vector<32xf32>
    %3 = vector.shape_cast %2 : vector<32xf32> to vector<1x32xf32>
    %4 = arith.mulf %1, %1 : vector<64x32xf32>
    %cst_2 = arith.constant dense<0.000000e+00> : vector<32xf32>
    %5 = vector.multi_reduction <add>, %4, %cst_2 [0] : vector<64x32xf32> to vector<32xf32>
    %6 = vector.shape_cast %5 : vector<32xf32> to vector<1x32xf32>
    %c0_3 = arith.constant 0 : index
    %c0_4 = arith.constant 0 : index
    %7 = vector.load %arg4[%c0_3, %c0_4] : memref<32x32xf32, #tpu.memory_space<vmem>>, vector<32x32xf32>
    %cst_5 = arith.constant dense<0.000000e+00> : vector<1x32xf32>
    %8 = tpu.matmul %3, %7, %cst_5 {dimension_numbers = #tpu.dot_dimension_numbers<[1], [0], [0], [1], [0, 0, 1, 1], [], []>} : vector<1x32xf32>, vector<32x32xf32>, vector<1x32xf32> -> vector<1x32xf32>
    %c0_6 = arith.constant 0 : index
    %c0_7 = arith.constant 0 : index
    %9 = vector.load %arg4[%c0_6, %c0_7] : memref<32x32xf32, #tpu.memory_space<vmem>>, vector<32x32xf32>
    %cst_8 = arith.constant dense<0.000000e+00> : vector<1x32xf32>
    %10 = tpu.matmul %6, %9, %cst_8 {dimension_numbers = #tpu.dot_dimension_numbers<[1], [0], [0], [1], [0, 0, 1, 1], [], []>} : vector<1x32xf32>, vector<32x32xf32>, vector<1x32xf32> -> vector<1x32xf32>
    %11 = arith.mulf %8, %8 : vector<1x32xf32>
    %12 = arith.subf %10, %11 : vector<1x32xf32>
    %cst_9 = arith.constant 0.000000e+00 : f32
    %13 = vector.broadcast %cst_9 : f32 to vector<1x32xf32>
    %14 = arith.maximumf %12, %13 : vector<1x32xf32>
    %cst_10 = arith.constant 9.99999997E-7 : f32
    %15 = vector.broadcast %cst_10 : f32 to vector<1x32xf32>
    %16 = arith.addf %14, %15 : vector<1x32xf32>
    %17 = math.rsqrt %16 : vector<1x32xf32>
    %18 = vector.broadcast %8 : vector<1x32xf32> to vector<64x32xf32>
    %19 = arith.subf %1, %18 : vector<64x32xf32>
    %c0_11 = arith.constant 0 : index
    %c0_12 = arith.constant 0 : index
    %20 = vector.load %arg2[%c0_11, %c0_12] : memref<1x32xf32, #tpu.memory_space<vmem>>, vector<1x32xf32>
    %21 = arith.mulf %17, %20 : vector<1x32xf32>
    %22 = vector.broadcast %21 : vector<1x32xf32> to vector<64x32xf32>
    %23 = arith.mulf %19, %22 : vector<64x32xf32>
    %c0_13 = arith.constant 0 : index
    %c0_14 = arith.constant 0 : index
    %24 = vector.load %arg3[%c0_13, %c0_14] : memref<1x32xf32, #tpu.memory_space<vmem>>, vector<1x32xf32>
    %25 = vector.broadcast %24 : vector<1x32xf32> to vector<64x32xf32>
    %26 = arith.addf %23, %25 : vector<64x32xf32>
    %27 = arith.truncf %26 : vector<64x32xf32> to vector<64x32xbf16>
    %c0_15 = arith.constant 0 : index
    %c0_16 = arith.constant 0 : index
    %28 = vector.load %arg5[%c0_15, %c0_16] : memref<32x96xbf16, #tpu.memory_space<vmem>>, vector<32x96xbf16>
    %cst_17 = arith.constant dense<0.000000e+00> : vector<64x96xf32>
    %29 = tpu.matmul %27, %28, %cst_17 {dimension_numbers = #tpu.dot_dimension_numbers<[1], [0], [0], [1], [0, 0, 1, 1], [], []>} : vector<64x32xbf16>, vector<32x96xbf16>, vector<64x96xf32> -> vector<64x96xf32>
    %c0_18 = arith.constant 0 : index
    %c0_19 = arith.constant 0 : index
    %30 = vector.load %arg6[%c0_18, %c0_19] : memref<1x96xf32, #tpu.memory_space<vmem>>, vector<1x96xf32>
    %31 = vector.broadcast %30 : vector<1x96xf32> to vector<64x96xf32>
    %32 = arith.addf %29, %31 : vector<64x96xf32>
    %33 = arith.truncf %32 : vector<64x96xf32> to vector<64x96xbf16>
    %34 = vector.extract_strided_slice %33 {offsets = [0, 0], sizes = [64, 32], strides = [1, 1]} : vector<64x96xbf16> to vector<64x32xbf16>
    %c0_20 = arith.constant 0 : index
    %c0_21 = arith.constant 0 : index
    %c0_22 = arith.constant 0 : index
    %35 = vector.load %arg7[%c0_20, %c0_21, %c0_22] : memref<1x64x32xbf16, #tpu.memory_space<vmem>>, vector<1x64x32xbf16>
    %36 = vector.shape_cast %35 : vector<1x64x32xbf16> to vector<64x32xbf16>
    %37 = vector.shape_cast %34 : vector<64x32xbf16> to vector<1x64x32xbf16>
    tpu.vector_store %arg7[%c0_20, %c0_21, %c0_22], %37 {strides = array<i32>} : memref<1x64x32xbf16, #tpu.memory_space<vmem>>, vector<1x64x32xbf16>,
    %38 = vector.extract_strided_slice %33 {offsets = [0, 32], sizes = [64, 32], strides = [1, 1]} : vector<64x96xbf16> to vector<64x32xbf16>
    %c0_23 = arith.constant 0 : index
    %c0_24 = arith.constant 0 : index
    %c0_25 = arith.constant 0 : index
    %39 = vector.load %arg8[%c0_23, %c0_24, %c0_25] : memref<1x64x32xbf16, #tpu.memory_space<vmem>>, vector<1x64x32xbf16>
    %40 = vector.shape_cast %39 : vector<1x64x32xbf16> to vector<64x32xbf16>
    %41 = vector.shape_cast %38 : vector<64x32xbf16> to vector<1x64x32xbf16>
    tpu.vector_store %arg8[%c0_23, %c0_24, %c0_25], %41 {strides = array<i32>} : memref<1x64x32xbf16, #tpu.memory_space<vmem>>, vector<1x64x32xbf16>,
    %42 = vector.extract_strided_slice %33 {offsets = [0, 64], sizes = [64, 32], strides = [1, 1]} : vector<64x96xbf16> to vector<64x32xbf16>
    %c0_26 = arith.constant 0 : index
    %c0_27 = arith.constant 0 : index
    %c0_28 = arith.constant 0 : index
    %43 = vector.load %arg9[%c0_26, %c0_27, %c0_28] : memref<1x64x32xbf16, #tpu.memory_space<vmem>>, vector<1x64x32xbf16>
    %44 = vector.shape_cast %43 : vector<1x64x32xbf16> to vector<64x32xbf16>
    %45 = vector.shape_cast %42 : vector<64x32xbf16> to vector<1x64x32xbf16>
    tpu.vector_store %arg9[%c0_26, %c0_27, %c0_28], %45 {strides = array<i32>} : memref<1x64x32xbf16, #tpu.memory_space<vmem>>, vector<1x64x32xbf16>,
    return
  }
  func.func @transform_0(%arg0: i32) -> (i32, i32, i32) {
    %c0_i32 = arith.constant 0 : i32
    %c0_i32_0 = arith.constant 0 : i32
    %c0_i32_1 = arith.constant 0 : i32
    return %arg0, %c0_i32, %c0_i32_0 : i32, i32, i32
  }
  func.func @transform_1(%arg0: i32) -> (i32, i32) {
    %c0_i32 = arith.constant 0 : i32
    %c0_i32_0 = arith.constant 0 : i32
    %c0_i32_1 = arith.constant 0 : i32
    return %c0_i32, %c0_i32_0 : i32, i32
  }
  func.func @transform_2(%arg0: i32) -> (i32, i32) {
    %c0_i32 = arith.constant 0 : i32
    %c0_i32_0 = arith.constant 0 : i32
    %c0_i32_1 = arith.constant 0 : i32
    return %c0_i32, %c0_i32_0 : i32, i32
  }
  func.func @transform_3(%arg0: i32) -> (i32, i32) {
    %c0_i32 = arith.constant 0 : i32
    %c0_i32_0 = arith.constant 0 : i32
    %c0_i32_1 = arith.constant 0 : i32
    return %c0_i32, %c0_i32_0 : i32, i32
  }
  func.func @transform_4(%arg0: i32) -> (i32, i32) {
    %c0_i32 = arith.constant 0 : i32
    %c0_i32_0 = arith.constant 0 : i32
    %c0_i32_1 = arith.constant 0 : i32
    return %c0_i32, %c0_i32_0 : i32, i32
  }
  func.func @transform_5(%arg0: i32) -> (i32, i32) {
    %c0_i32 = arith.constant 0 : i32
    %c0_i32_0 = arith.constant 0 : i32
    %c0_i32_1 = arith.constant 0 : i32
    return %c0_i32, %c0_i32_0 : i32, i32
  }
  func.func @transform_6(%arg0: i32) -> (i32, i32, i32) {
    %c0_i32 = arith.constant 0 : i32
    %c0_i32_0 = arith.constant 0 : i32
    %c0_i32_1 = arith.constant 0 : i32
    return %arg0, %c0_i32, %c0_i32_0 : i32, i32, i32
  }
  func.func @transform_7(%arg0: i32) -> (i32, i32, i32) {
    %c0_i32 = arith.constant 0 : i32
    %c0_i32_0 = arith.constant 0 : i32
    %c0_i32_1 = arith.constant 0 : i32
    return %arg0, %c0_i32, %c0_i32_0 : i32, i32, i32
  }
  func.func @transform_8(%arg0: i32) -> (i32, i32, i32) {
    %c0_i32 = arith.constant 0 : i32
    %c0_i32_0 = arith.constant 0 : i32
    %c0_i32_1 = arith.constant 0 : i32
    return %arg0, %c0_i32, %c0_i32_0 : i32, i32, i32
  }
}

</mosaic_0001>

<bundles_post_ra>
// kernel: tpu_custom_call.1
= control target key start
LH: loop header
LB: loop body
LE: loop exit
PB: predicated region body
PF: predicated region fallthrough
CT: control target
= control target key end

     0   :  { %s872_s27 = smov 0   ;;  %s1061_s0 = inlined_call_operand.vmem [shape: f32[2,64,32], index: 0, kind: input, shape index: {}]   ;;  %s1062_s1 = inlined_call_operand.vmem [shape: f32[1,32], index: 1, kind: input, shape index: {}]   ;;  %s1063_s2 = inlined_call_operand.vmem [shape: f32[1,32], index: 2, kind: input, shape index: {}]   ;;  %s1064_s3 = inlined_call_operand.vmem [shape: f32[32,32], index: 3, kind: input, shape index: {}]   ;;  %s1065_s4 = inlined_call_operand.vmem [shape: bf16[32,96], index: 4, kind: input, shape index: {}]   ;;  %s1066_s5 = inlined_call_operand.vmem [shape: f32[1,96], index: 5, kind: input, shape index: {}]   ;;  %s1067_s6 = inlined_call_operand.vmem [shape: bf16[2,64,32], index: 6, kind: output, shape index: {0}]   ;;  %s1068_s7 = inlined_call_operand.vmem [shape: bf16[2,64,32], index: 7, kind: output, shape index: {1}]   ;;  %s1069_s8 = inlined_call_operand.vmem [shape: bf16[2,64,32], index: 8, kind: output, shape index: {2}]  }
   0x1 LB: > { %s762_s28 = sadd.s32 4294967295, %s823_s27   ;;  %p766_p0 = scmp.ge.s32.totalorder %s823_s27, 1  ;;  %s823_s27 = sphi %s872_s27, %s19_s27  }
   0x2   : > { %p267_p1 = scmp.lt.s32.totalorder %s823_s27, 3 }
   0x4   : > { %p268_p2 = pnand %p766_p0, %p267_p1 }
   0x5   : > { %p311_p3 = scmp.lt.s32.totalorder (!%p268_p2), %s762_s28, 1  ;;  %s825_s13 = smov (!%p268_p2), 96  }
   0x6   : > { %271 = sbr.rel (%p268_p2) target bundleno = 492 (0x1ec), region = 44 }
   0xb   : > { %v394_v0 = vld [vmem:[%s1064_s3 + $0x18] sm:$0xff]  ;;  %v393_v1 = vld [vmem:[%s1064_s3 + $0x10] sm:$0xff]  ;;  %v392_v2 = vld [vmem:[%s1064_s3 + $0x8] sm:$0xff]  ;;  %s1071_s28 = smov (!%p311_p3, %s762_s28), 1  ;;  %vm340_vm0 = vcmask 261120   ;;  %vm560_vm4 = vcmask 257024  }
   0xc   : > { %410 = vmatpush.msra.mxu0 %v394_v0  ;;  %433 = vmatpush.msra.mxu1 %v394_v0  ;;  %v391_v3 = vld [vmem:[%s1064_s3] sm:$0xff]  ;;  %s791_s15 = sshll.u32 %s1071_s28, 6  ;;  %v796_v62 = vld [vmem:[%s1065_s4 + $0x8] sm:$0xff]  ;;  %s984_s9 = sshll.u32 %s1071_s28, 5 }
   0xd   : > { %s315_s18 = scalar_lea.vmem %s1061_s0, %s791_s15  ;;  %v795_v0 = vld [vmem:[%s1065_s4] sm:$0xff]  ;;  %798 = vmatpush.bf16.msra.mxu2 %v796_v62  ;;  %799 = vmatpush.bf16.msra.mxu3 %v796_v62  ;;  %s990_s12 = scalar_lea.vmem %s1067_s6, %s984_s9 }
   0xe   : > { %411 = vmatpush.msra.mxu0 %v393_v1  ;;  %434 = vmatpush.msra.mxu1 %v393_v1  ;;  %v898_v4 = vld [vmem:[%s315_s18] sm:$0xff]  ;;  %v900_v5 = vld [vmem:[%s315_s18 + $0x8] sm:$0xff]  ;;  %v902_v6 = vld [vmem:[%s315_s18 + $0x10] sm:$0xff]  ;;  %s826_s28 = smov 64   ;;  %s1028_s16 = scalar_lea.vmem %s1069_s8, %s984_s9 }
   0xf   : > { %v904_v7 = vld [vmem:[%s315_s18 + $0x18] sm:$0xff]  ;;  %v341_v8 = vsel %vm340_vm0, %v898_v4, 0.0  ;;  %v342_v9 = vsel %vm340_vm0, %v900_v5, 0.0  ;;  %v344_v10 = vsel %vm340_vm0, %v902_v6, 0.0  ;;  %v362_v11 = vmul.f32 %v898_v4, %v898_v4  ;;  %v914_v12 = vld [vmem:[%s315_s18 + $0x20] sm:$0xff]  ;;  %v922_v17 = vld [vmem:[%s315_s18 + $0x28] sm:$0xff]  ;;  %s325_s19 = scalar_lea.vmem %s1068_s7, %s984_s9 }
  0x10   : > { %412 = vmatpush.msra.mxu0 %v392_v2  ;;  %435 = vmatpush.msra.mxu1 %v392_v2  ;;  %v343_v13 = vadd.f32 %v342_v9, %v341_v8  ;;  %v346_v14 = vsel %vm340_vm0, %v904_v7, 0.0  ;;  %v363_v15 = vmul.f32 %v900_v5, %v900_v5  ;;  %v364_v16 = vmul.f32 %v902_v6, %v902_v6  ;;  %v932_v24 = vld [vmem:[%s315_s18 + $0x30] sm:$0xff]  ;;  %v940_v31 = vld [vmem:[%s315_s18 + $0x38] sm:$0xff] }
  0x11   : > { %v365_v19 = vmul.f32 %v904_v7, %v904_v7  ;;  %v348_v20 = vsel %vm340_vm0, %v914_v12, 0.0  ;;  %v366_v21 = vmul.f32 %v914_v12, %v914_v12  ;;  %v370_v22 = vsel %vm340_vm0, %v362_v11, 0.0  ;;  %801 = vmatpush.bf16.msra.mxu2 %v795_v0  ;;  %802 = vmatpush.bf16.msra.mxu3 %v795_v0 }
  0x12   : > { %413 = vmatpush.msra.mxu0 %v391_v3  ;;  %436 = vmatpush.msra.mxu1 %v391_v3  ;;  %v345_v18 = vadd.f32 %v344_v10, %v343_v13  ;;  %v371_v23 = vsel %vm340_vm0, %v363_v15, 0.0  ;;  %v373_v27 = vsel %vm340_vm0, %v364_v16, 0.0  ;;  %v350_v28 = vsel %vm340_vm0, %v922_v17, 0.0 }
  0x13   : > { %v372_v26 = vadd.f32 %v371_v23, %v370_v22  ;;  %v367_v29 = vmul.f32 %v922_v17, %v922_v17  ;;  %v375_v30 = vsel %vm340_vm0, %v365_v19, 0.0  ;;  %v352_v34 = vsel %vm340_vm0, %v932_v24, 0.0  ;;  %v464_v19 = vld [vmem:[%s1062_s1] sm:$0x1] }
  0x14   : > { %v347_v25 = vadd.f32 %v346_v14, %v345_v18  ;;  %v368_v35 = vmul.f32 %v932_v24, %v932_v24  ;;  %v377_v36 = vsel %vm340_vm0, %v366_v21, 0.0  ;;  %v354_v39 = vsel %vm340_vm0, %v940_v31, 0.0  ;;  %529 = vmatpush.bf16.msrb.mxu0 %v796_v62  ;;  %797 = vmatpush.bf16.msrb.mxu1 %v796_v62 }
  0x15   : > { %v374_v33 = vadd.f32 %v373_v27, %v372_v26  ;;  %v369_v40 = vmul.f32 %v940_v31, %v940_v31  ;;  %v379_v41 = vsel %vm340_vm0, %v367_v29, 0.0  ;;  %v813_v26 = vld [vmem:[%s1063_s2] ss:$0 sm:$0xff] }
  0x16   : > { %v349_v32 = vadd.f32 %v348_v20, %v347_v25  ;;  %v381_v44 = vsel %vm340_vm0, %v368_v35, 0.0 }
  0x17   : > { %v376_v38 = vadd.f32 %v375_v30, %v374_v33  ;;  %v383_v47 = vsel %vm340_vm0, %v369_v40, 0.0 }
  0x18   : > { %v351_v37 = vadd.f32 %v350_v28, %v349_v32  ;;  %530 = vmatpush.bf16.msrb.mxu0 %v795_v0  ;;  %800 = vmatpush.bf16.msrb.mxu1 %v795_v0 }
  0x19   : > { %v378_v43 = vadd.f32 %v377_v36, %v376_v38 }
  0x1a   : > { %v353_v42 = vadd.f32 %v352_v34, %v351_v37 }
  0x1b   : > { %v380_v46 = vadd.f32 %v379_v41, %v378_v43 }
  0x1c   : > { %v355_v45 = vadd.f32 %v354_v39, %v353_v42 }
  0x1d   : > { %v382_v49 = vadd.f32 %v381_v44, %v380_v46  ;;  %v814_v46 = vld [vmem:[%s1066_s5] ss:$0 sm:$0xff] }
  0x1e   : > { %v356_v48 = vrot.slane %v355_v45, 4 }
  0x1f   : > { %v384_v51 = vadd.f32 %v383_v47, %v382_v49 }
  0x20   : > { %v357_v50 = vadd.f32 %v356_v48, %v355_v45 }
  0x21   : > { %v385_v53 = vrot.slane %v384_v51, 4 }
  0x22   : > { %v358_v52 = vrot.slane %v357_v50, 2 }
  0x23   : > { %v386_v55 = vadd.f32 %v385_v53, %v384_v51 }
  0x24   : > { %v359_v54 = vadd.f32 %v358_v52, %v357_v50 }
  0x25   : > { %v387_v57 = vrot.slane %v386_v55, 2 }
  0x26   : > { %v360_v56 = vrot.slane %v359_v54, 1 }
  0x27   : > { %v388_v59 = vadd.f32 %v387_v57, %v386_v55 }
  0x28   : > { %v361_v58 = vadd.f32 %v360_v56, %v359_v54 }
  0x29   : > { %v389_v60 = vrot.slane %v388_v59, 1 }
  0x2a   : > { %775 = vmatmul.msk.f32.vlgmr.msra.gmra.mxu0 %vm340_vm0, %v361_v58 }
  0x2b   : > { %v390_v61 = vadd.f32 %v389_v60, %v388_v59 }
  0x2d   : > { %776 = vmatmul.msk.f32.vlgmr.msra.gmra.mxu1 %vm340_vm0, %v390_v61 }
  0xa7   : > { %v415_v63 = vpop.f32.mrf.mxu0 }
  0xa8   : > { %v441_v1 = vmul.f32 %v415_v63, %v415_v63  ;;  %v455_v16 = vperm.slane %v415_v63, 0 }
  0xaa   : > { %v438_v2 = vpop.f32.mrf.mxu1  ;;  %v456_v22 = vsub.f32 %v898_v4, %v455_v16  ;;  %v457_v25 = vsub.f32 %v900_v5, %v455_v16  ;;  %v458_v27 = vsub.f32 %v902_v6, %v455_v16  ;;  %v459_v28 = vsub.f32 %v904_v7, %v455_v16 }
  0xab   : > { %v442_v3 = vsub.f32 %v438_v2, %v441_v1  ;;  %v460_v29 = vsub.f32 %v914_v12, %v455_v16  ;;  %v461_v30 = vsub.f32 %v922_v17, %v455_v16  ;;  %v462_v32 = vsub.f32 %v932_v24, %v455_v16 }
  0xac   : > { %v463_v33 = vsub.f32 %v940_v31, %v455_v16 }
  0xad   : > { %v443_v8 = vmax.f32 %v442_v3, 0.0 }
  0xaf   : > { %v444_v9 = vadd.f32 1e-06, %v443_v8 }
  0xb1   : > { %815 = vrsqrt.f32 %v444_v9  ;;  %vm451_vm2 = vweird.f32 %v444_v9 }
  0xb7   : > { %v816_v10 = vpop.eup %815 }
  0xb8   : > { %v446_v11 = vmul.f32 %v816_v10, %v444_v9  ;;  %vm452_vm1 = vweird.f32 %v816_v10 }
  0xb9   : > { %vm453_vm3 = vmor %vm451_vm2, %vm452_vm1 }
  0xba   : > { %v447_v13 = vmul.f32 %v816_v10, %v446_v11 }
  0xbc   : > { %v448_v14 = vmul.f32 0.5, %v447_v13 }
  0xbe   : > { %v449_v15 = vsub.f32 1.5, %v448_v14 }
  0xc0   : > { %v450_v18 = vmul.f32 %v816_v10, %v449_v15 }
  0xc2   : > { %v454_v20 = vsel %vm453_vm3, %v816_v10, %v450_v18 }
  0xc3   : > { %v465_v21 = vmul.f32 %v464_v19, %v454_v20 }
  0xc5   : > { %v466_v23 = vperm.slane %v465_v21, 0 }
  0xc7   : > { %v467_v4 = vmul.f32 %v466_v23, %v456_v22  ;;  %v468_v34 = vmul.f32 %v466_v23, %v457_v25  ;;  %v469_v35 = vmul.f32 %v466_v23, %v458_v27  ;;  %v470_v5 = vmul.f32 %v466_v23, %v459_v28 }
  0xc8   : > { %v471_v36 = vmul.f32 %v466_v23, %v460_v29  ;;  %v472_v37 = vmul.f32 %v466_v23, %v461_v30  ;;  %v473_v38 = vmul.f32 %v466_v23, %v462_v32  ;;  %v474_v39 = vmul.f32 %v466_v23, %v463_v33 }
  0xc9   : > { %v479_v40 = vadd.f32 %v813_v26, %v467_v4  ;;  %v480_v6 = vadd.f32 %v813_v26, %v468_v34  ;;  %v481_v7 = vadd.f32 %v813_v26, %v469_v35  ;;  %v482_v41 = vadd.f32 %v813_v26, %v470_v5 }
  0xca   : > { %v483_v12 = vadd.f32 %v813_v26, %v471_v36  ;;  %v484_v42 = vadd.f32 %v813_v26, %v472_v37  ;;  %v485_v17 = vadd.f32 %v813_v26, %v473_v38  ;;  %v486_v43 = vadd.f32 %v813_v26, %v474_v39 }
  0xcb   : > { %v487_v24 = vpack.c.bf16 %v480_v6, %v479_v40  ;;  %v488_v44 = vpack.c.bf16 %v482_v41, %v481_v7 }
  0xcc   : > { %v489_v31 = vpack.c.bf16 %v484_v42, %v483_v12  ;;  %v490_v45 = vpack.c.bf16 %v486_v43, %v485_v17 }
  0xcd   : > { %785 = vmatmul.msk.bf16.vlgmr.msrb.gmra.mxu0 %vm340_vm0, %v487_v24  ;;  %786 = vmatmul.msk.bf16.vlgmr.msrb.gmra.mxu1 %vm340_vm0, %v488_v44 }
  0xce   : > { %787 = vmatmul.msk.bf16.vlgmr.msra.gmra.mxu2 %vm340_vm0, %v489_v31  ;;  %788 = vmatmul.msk.bf16.vlgmr.msra.gmra.mxu3 %vm340_vm0, %v490_v45 }
 0x14a   : > { %v532_v47 = vpop.f32.mrf.mxu0  ;;  %v537_v48 = vpop.f32.mrf.mxu1 }
 0x14b   : > { %v533_v49 = vadd.f32 %v814_v46, %v532_v47  ;;  %v538_v50 = vadd.f32 %v814_v46, %v537_v48 }
 0x14d   : > { %v552_v51 = vpack.c.bf16 %v533_v49, %v533_v49  ;;  %v554_v52 = vpack.c.bf16 %v538_v50, %v538_v50 }
 0x14f   : > { %561 = vst.msk [vmem:[%s990_s12] sm:$0xf] %vm560_vm4, %v552_v51  ;;  %581 = vrot.lane.b32.xlu1 %v554_v52, %s825_s13  ;;  %609 = vrot.lane.b32.xlu2 %v552_v51, %s826_s28 }
 0x150   : > { %563 = vst.msk [vmem:[%s990_s12 + $0x8] sm:$0xf] %vm560_vm4, %v554_v52  ;;  %577 = vrot.lane.b32.xlu0 %v552_v51, %s825_s13 }
 0x151   : > { %v542_v53 = vpop.f32.mrf.mxu2  ;;  %v547_v54 = vpop.f32.mrf.mxu3 }
 0x152   : > { %v543_v55 = vadd.f32 %v814_v46, %v542_v53  ;;  %v548_v56 = vadd.f32 %v814_v46, %v547_v54  ;;  %v534_v57 = vpop.f32.mrf.mxu0  ;;  %v539_v58 = vpop.f32.mrf.mxu1 }
 0x153   : > { %v535_v59 = vadd.f32 %v814_v46, %v534_v57  ;;  %v540_v60 = vadd.f32 %v814_v46, %v539_v58 }
 0x154   : > { %v556_v61 = vpack.c.bf16 %v543_v55, %v543_v55  ;;  %v558_v62 = vpack.c.bf16 %v548_v56, %v548_v56 }
 0x155   : > { %v553_v63 = vpack.c.bf16 %v535_v59, %v535_v59  ;;  %v555_v0 = vpack.c.bf16 %v540_v60, %v540_v60 }
 0x156   : > { %565 = vst.msk [vmem:[%s990_s12 + $0x10] sm:$0xf] %vm560_vm4, %v556_v61 }
 0x157   : > { %567 = vst.msk [vmem:[%s990_s12 + $0x18] sm:$0xf] %vm560_vm4, %v558_v62  ;;  %613 = vrot.lane.b32.xlu1 %v554_v52, %s826_s28  ;;  %585 = vrot.lane.b32.xlu2 %v556_v61, %s825_s13 }
 0x158   : > { %562 = vst.msk [vmem:[%s990_s12 + $0x4] sm:$0xf] %vm560_vm4, %v553_v63  ;;  %589 = vrot.lane.b32.xlu0 %v558_v62, %s825_s13 }
 0x159   : > { %564 = vst.msk [vmem:[%s990_s12 + $0xc] sm:$0xf] %vm560_vm4, %v555_v0  ;;  %v544_v1 = vpop.f32.mrf.mxu2  ;;  %v549_v2 = vpop.f32.mrf.mxu3 }
 0x15a   : > { %v545_v3 = vadd.f32 %v814_v46, %v544_v1  ;;  %v550_v8 = vadd.f32 %v814_v46, %v549_v2 }
 0x15c   : > { %v557_v9 = vpack.c.bf16 %v545_v3, %v545_v3  ;;  %v559_v10 = vpack.c.bf16 %v550_v8, %v550_v8 }
 0x15e   : > { %566 = vst.msk [vmem:[%s990_s12 + $0x14] sm:$0xf] %vm560_vm4, %v557_v9 }
 0x15f   : > { %568 = vst.msk [vmem:[%s990_s12 + $0x1c] sm:$0xf] %vm560_vm4, %v559_v10  ;;  %583 = vrot.lane.b32.xlu1 %v555_v0, %s825_s13  ;;  %615 = vrot.lane.b32.xlu2 %v555_v0, %s826_s28 }
 0x160   : > { %617 = vrot.lane.b32.xlu0 %v556_v61, %s826_s28 }
 0x167   : > { %591 = vrot.lane.b32.xlu1 %v559_v10, %s825_s13  ;;  %587 = vrot.lane.b32.xlu2 %v557_v9, %s825_s13 }
 0x168   : > { %579 = vrot.lane.b32.xlu0 %v553_v63, %s825_s13 }
 0x16f   : > { %619 = vrot.lane.b32.xlu1 %v557_v9, %s826_s28  ;;  %621 = vrot.lane.b32.xlu2 %v558_v62, %s826_s28 }
 0x170   : > { %611 = vrot.lane.b32.xlu0 %v553_v63, %s826_s28 }
 0x178   : > { %623 = vrot.lane.b32.xlu0 %v559_v10, %s826_s28 }
 0x1a9   : > { %v610_v11 = vpop.permute.xlu2 %609 }
 0x1aa   : > { %633 = vst.msk [vmem:[%s1028_s16] sm:$0xf] %vm560_vm4, %v610_v11 }
 0x1b1   : > { %v586_v13 = vpop.permute.xlu2 %585 }
 0x1b2   : > { %605 = vst.msk [vmem:[%s325_s19 + $0x10] sm:$0xf] %vm560_vm4, %v586_v13 }
 0x1b9   : > { %v616_v14 = vpop.permute.xlu2 %615 }
 0x1ba   : > { %636 = vst.msk [vmem:[%s1028_s16 + $0xc] sm:$0xf] %vm560_vm4, %v616_v14 }
 0x1c1   : > { %v582_v15 = vpop.permute.xlu1 %581  ;;  %v588_v16 = vpop.permute.xlu2 %587 }
 0x1c2   : > { %603 = vst.msk [vmem:[%s325_s19 + $0x8] sm:$0xf] %vm560_vm4, %v582_v15  ;;  %v578_v18 = vpop.permute.xlu0 %577 }
 0x1c3   : > { %606 = vst.msk [vmem:[%s325_s19 + $0x14] sm:$0xf] %vm560_vm4, %v588_v16 }
 0x1c4   : > { %601 = vst.msk [vmem:[%s325_s19] sm:$0xf] %vm560_vm4, %v578_v18 }
 0x1c9   : > { %v614_v19 = vpop.permute.xlu1 %613  ;;  %v622_v20 = vpop.permute.xlu2 %621 }
 0x1ca   : > { %635 = vst.msk [vmem:[%s1028_s16 + $0x8] sm:$0xf] %vm560_vm4, %v614_v19  ;;  %v590_v21 = vpop.permute.xlu0 %589 }
 0x1cb   : > { %639 = vst.msk [vmem:[%s1028_s16 + $0x18] sm:$0xf] %vm560_vm4, %v622_v20 }
 0x1cc   : > { %607 = vst.msk [vmem:[%s325_s19 + $0x18] sm:$0xf] %vm560_vm4, %v590_v21 }
 0x1d1   : > { %v584_v22 = vpop.permute.xlu1 %583 }
 0x1d2   : > { %604 = vst.msk [vmem:[%s325_s19 + $0xc] sm:$0xf] %vm560_vm4, %v584_v22  ;;  %v618_v23 = vpop.permute.xlu0 %617 }
 0x1d3   : > { %637 = vst.msk [vmem:[%s1028_s16 + $0x10] sm:$0xf] %vm560_vm4, %v618_v23 }
 0x1d9   : > { %v592_v25 = vpop.permute.xlu1 %591 }
 0x1da   : > { %608 = vst.msk [vmem:[%s325_s19 + $0x1c] sm:$0xf] %vm560_vm4, %v592_v25  ;;  %v580_v26 = vpop.permute.xlu0 %579 }
 0x1db   : > { %602 = vst.msk [vmem:[%s325_s19 + $0x4] sm:$0xf] %vm560_vm4, %v580_v26 }
 0x1e1   : > { %v620_v27 = vpop.permute.xlu1 %619 }
 0x1e2   : > { %638 = vst.msk [vmem:[%s1028_s16 + $0x14] sm:$0xf] %vm560_vm4, %v620_v27  ;;  %v612_v28 = vpop.permute.xlu0 %611 }
 0x1e3   : > { %634 = vst.msk [vmem:[%s1028_s16 + $0x4] sm:$0xf] %vm560_vm4, %v612_v28 }
 0x1ea   : > { %v624_v29 = vpop.permute.xlu0 %623 }
 0x1eb   : > { %640 = vst.msk [vmem:[%s1028_s16 + $0x1c] sm:$0xf] %vm560_vm4, %v624_v29 }
 0x1ec PF: > { %s19_s27 = sadd.s32 1, %s823_s27  }
 0x1ed   : > { %p16_p4 = scmp.ge.s32.totalorder %s19_s27, 4  }
 0x1ef   :  { %18 = sbr.rel (!%p16_p4) target bundleno = 1 (0x1), region = 98 }

</bundles_post_ra>
